<compile_context>
chip_gen: v7x
topology: tpu7x:2x2x1
jax: 0.10.0
libtpu: 0.0.40
codegen_flags: <defaults>
</compile_context>

<pallas_src>
import functools
import math

import jax
import jax.numpy as jnp
import numpy as np
from jax.experimental import pallas as pl
from jax.experimental.pallas import tpu as pltpu


def _cin_kernel(xj_ref, x0_ref, w_ref, out_ref, pout_ref, acc_ref, *,
                emb_dim, mxu_dtype=None, low_precision_multiply=True):
    """One (batch-block i, C-chunk k) grid step.

    xj_ref  : (Cc, L)     previous-layer maps, lane-dense (L = BB * emb_dim)
    x0_ref  : (N, L)      raw feature maps, lane-dense
    w_ref   : (F, Cc*N)   weight chunk
    out_ref : (F, L)      cin_out slab for this batch block (written at last k)
    pout_ref: (BB, F)     cin_p for this batch block (written at last k)
    acc_ref : (F, L) f32  VMEM accumulator across C-chunks
    """
    k = pl.program_id(1)

    @pl.when(k == 0)
    def _init():
        acc_ref[...] = jnp.zeros_like(acc_ref)

    xj = xj_ref[...]
    x0 = x0_ref[...]
    w = w_ref[...]
    cc, lanes = xj.shape
    n = x0.shape[0]

    if mxu_dtype is not None and low_precision_multiply:
        # v6e/v7x: bf16 VALU -> halves the hadamard slab and vreg pressure.
        xj = xj.astype(mxu_dtype)
        x0 = x0.astype(mxu_dtype)

    # hadamard[c, n, l] = xj[c, l] * x0[n, l]; (c, n) flattens onto the MXU K
    # axis.  The lane axis L is untouched by the reshape.
    had = (xj[:, None, :] * x0[None, :, :]).reshape(cc * n, lanes)
    if mxu_dtype is not None:
        had = had.astype(mxu_dtype)
        w = w.astype(mxu_dtype)

    # f32 accumulation on the MXU regardless of operand dtype.
    acc_ref[...] += jnp.dot(w, had, preferred_element_type=jnp.float32)

    @pl.when(k == pl.num_programs(1) - 1)
    def _finalize():
        acc = acc_ref[...]
        f = acc.shape[0]
        out_ref[...] = acc.astype(out_ref.dtype)
        # Fused cin_p: reduce the embedding dim in-kernel (finalize path only)
        # instead of re-reading cin_out from HBM in the wrapper.
        p = acc.reshape(f, lanes // emb_dim, emb_dim).sum(axis=-1)   # (F, BB)
        pout_ref[...] = p.T.astype(pout_ref.dtype)                   # (BB, F)


def _round_up(x, m):
    return ((x + m - 1) // m) * m


def _choose_tiling(b, c, n, f, d, *, in_bytes, out_bytes, op_bytes,
                   vmem_budget_bytes, target_lanes=8192, min_lanes_per_step=2048):
    """Pick (batch block BB, C chunk Cc) from a VMEM budget.

    VMEM per lane: double-buffered xj/x0/cin_out blocks + f32 accumulator +
    hadamard slab; plus the double-buffered W chunk.  Maximizes the lane width
    (amortizes ~0.35us/step overhead), chunking C only when needed to keep the
    slab from forcing tiny tiles.  Prefers >= 2 batch steps when tiles stay
    large (pipeline overlap / v7x megacore).
    """
    # C-chunk candidates, largest first; each keeps every BlockSpec legal
    # (Cc == C, or Cc % 8 == 0 and (Cc*N) % 128 == 0 with C % Cc == 0).
    cc_cands = [c] + [cc for cc in range(c - 1, 0, -1)
                      if c % cc == 0 and cc % 8 == 0 and (cc * n) % 128 == 0]

    def max_lanes_for(cc):
        fixed = 2 * f * cc * n * in_bytes            # W chunk (double-buffered)
        per_lane = (2 * cc * in_bytes                # xj blocks
                    + 2 * n * in_bytes               # x0 blocks
                    + 2 * f * out_bytes              # cin_out blocks
                    + 4 * f                          # f32 accumulator
                    + cc * n * op_bytes)             # hadamard slab
        return max((vmem_budget_bytes - fixed) // per_lane, 0)

    c_chunk = cc_cands[0]
    for cc in cc_cands:
        c_chunk = cc
        if max_lanes_for(cc) >= min(target_lanes, b * d):
            break
    max_lanes = max_lanes_for(c_chunk)

    # Batch-block candidates: lane-dense (BB*D % 128 == 0) and legal for the
    # (BB, F) cin_p output block (BB % 8 == 0 or BB == padded batch).
    bb_cands = [bb for bb in range(1, b + 1)
                if b % bb == 0
                and (bb * d) % 128 == 0
                and (bb % 8 == 0 or bb == b)]
    fits = [bb for bb in bb_cands if bb * d <= max_lanes]
    pool = fits if fits else bb_cands
    bb = max(pool)
    if b // bb < 2:
        multi = [x for x in pool if b // x >= 2 and x * d >= min_lanes_per_step]
        if multi:
            bb = max(multi)
    return bb, c_chunk


def cin_layer_transposed(xj_t, x0_t, w, *, emb_dim, mxu_dtype=None,
                         low_precision_multiply=True,
                         vmem_budget_bytes=40 * 1024 * 1024):
    """CIN layer in the chainable lane-dense layout.

    xj_t: (C, B*D)   x0_t: (N, B*D)   w: (F, C, N)
    Returns (cin_out_t (F, B*D), cin_p_t (B, F)).  cin_out_t is already the
    xj_t layout the next CIN layer needs, so a CIN stack chains these with no
    per-layer transposes (x0_t is transposed once per forward pass; convert to
    (B, F, D) only at the stack boundary).
    """
    c, bd = xj_t.shape
    n = x0_t.shape[0]
    f = w.shape[0]
    d = emb_dim
    assert bd % d == 0
    b = bd // d
    assert w.shape == (f, c, n)
    assert bd % 128 == 0, "pad the batch so B*D is a multiple of 128"

    in_bytes = xj_t.dtype.itemsize
    out_bytes = in_bytes
    op_bytes = np.dtype(mxu_dtype).itemsize if mxu_dtype is not None else in_bytes

    bb, c_chunk = _choose_tiling(
        b, c, n, f, d, in_bytes=in_bytes, out_bytes=out_bytes, op_bytes=op_bytes,
        vmem_budget_bytes=vmem_budget_bytes)
    lanes = bb * d
    n_batch_blocks = b // bb
    n_c_chunks = c // c_chunk

    w_flat = w.reshape(f, c * n)
    if mxu_dtype is not None:
        w_flat = w_flat.astype(mxu_dtype)     # halves W VMEM/DMA footprint

    kernel = functools.partial(
        _cin_kernel, emb_dim=d, mxu_dtype=mxu_dtype,
        low_precision_multiply=low_precision_multiply)

    # VMEM actually needed for the chosen tiling (+ headroom).
    vmem_need = (2 * (c_chunk + n) * lanes * in_bytes
                 + 2 * f * lanes * out_bytes
                 + 4 * f * lanes
                 + c_chunk * n * lanes * op_bytes
                 + 2 * f * c_chunk * n * w_flat.dtype.itemsize)
    vmem_limit = int(min(max(vmem_need * 5 // 4 + (2 << 20), 32 << 20), 128 << 20))

    out_t, pout_t = pl.pallas_call(
        kernel,
        out_shape=(
            jax.ShapeDtypeStruct((f, bd), xj_t.dtype),   # cin_out, lane-dense
            jax.ShapeDtypeStruct((b, f), xj_t.dtype),    # cin_p (fused)
        ),
        grid_spec=pltpu.PrefetchScalarGridSpec(
            num_scalar_prefetch=0,
            grid=(n_batch_blocks, n_c_chunks),
            in_specs=[
                pl.BlockSpec((c_chunk, lanes), lambda i, k: (k, i)),
                pl.BlockSpec((n, lanes), lambda i, k: (0, i)),
                # Constant over the batch axis: re-DMA'd only when the C-chunk
                # index changes (once total when n_c_chunks == 1).
                pl.BlockSpec((f, c_chunk * n), lambda i, k: (0, k)),
            ],
            out_specs=[
                pl.BlockSpec((f, lanes), lambda i, k: (0, i)),
                pl.BlockSpec((bb, f), lambda i, k: (i, 0)),
            ],
            scratch_shapes=[pltpu.VMEM((f, lanes), jnp.float32)],
        ),
        compiler_params=pltpu.CompilerParams(
            dimension_semantics=("parallel", "arbitrary"),
            vmem_limit_bytes=vmem_limit,
        ),
    )(xj_t, x0_t, w_flat)
    return out_t, pout_t


def cin_layer(xj, x0, w, *, mxu_dtype=None, low_precision_multiply=True,
              vmem_budget_bytes=40 * 1024 * 1024):
    """PyTorch-equivalent CINLayer.forward.

    xj: (B, C, D)  x0: (B, N, D)  w: (F, C, N)
    Returns (cin_out (B, F, D), cin_p_out (B, F)).
    """
    b, c, d = xj.shape
    n = x0.shape[1]
    f = w.shape[0]

    # Pad batch so B*D is a multiple of 128 (unmasked, lane-dense stores);
    # padded rows are zero -> zero outputs, sliced away below.
    step = 128 // math.gcd(d, 128)
    b_pad = _round_up(b, step)
    if b_pad != b:
        pad = ((0, b_pad - b), (0, 0), (0, 0))
        xj = jnp.pad(xj, pad)
        x0 = jnp.pad(x0, pad)

    # Boundary layout plumbing (done once per CIN stack, not per layer).
    xj_t = jnp.transpose(xj, (1, 0, 2)).reshape(c, b_pad * d)
    x0_t = jnp.transpose(x0, (1, 0, 2)).reshape(n, b_pad * d)

    out_t, pout_t = cin_layer_transposed(
        xj_t, x0_t, w, emb_dim=d, mxu_dtype=mxu_dtype,
        low_precision_multiply=low_precision_multiply,
        vmem_budget_bytes=vmem_budget_bytes)

    cin_out = out_t.reshape(f, b_pad, d).transpose(1, 0, 2)[:b]
    cin_p_out = pout_t[:b]
    return cin_out, cin_p_out


def ref_cin(xj, x0, w):
    """Pure-JAX reference mirroring the PyTorch forward exactly."""
    hadamard = x0[:, None, :, :] * xj[:, :, None, :]          # (B, C, N, D)
    out = jnp.einsum('bcnd,fcn->bfcd', hadamard, w)           # (B, F, C, D)
    cin_out = jnp.sum(out, axis=2)                            # (B, F, D)
    cin_p_out = jnp.sum(cin_out, axis=-1)                     # (B, F)
    return cin_out, cin_p_out


if __name__ == "__main__":
    # Small shapes consistent with the module.
    B = 16         # batch
    C = 4          # cin_hidden_size (previous CIN layer feature maps)
    N = 8          # num_features
    D = 16         # embedding dim
    F = 6          # feature_maps (this layer's output maps)

    key = jax.random.PRNGKey(0)
    k_xj, k_x0, k_w = jax.random.split(key, 3)

    xj = jax.random.normal(k_xj, (B, C, D), dtype=jnp.float32)
    x0 = jax.random.normal(k_x0, (B, N, D), dtype=jnp.float32)

    # Deterministic xavier_uniform_ equivalent for W of shape (F, C, N).
    fan_in, fan_out = C * N, F * N
    bound = math.sqrt(6.0 / (fan_in + fan_out))
    W = jax.random.uniform(
        k_w, (F, C, N), dtype=jnp.float32, minval=-bound, maxval=bound)

    cin_out_ref, cin_p_ref = ref_cin(xj, x0, W)

    # Exact f32 path (default).
    cin_out, cin_p_out = cin_layer(xj, x0, W)
    jax.block_until_ready((cin_out, cin_p_out))
    np.testing.assert_allclose(
        np.asarray(cin_out), np.asarray(cin_out_ref), rtol=1e-5, atol=1e-4)
    np.testing.assert_allclose(
        np.asarray(cin_p_out), np.asarray(cin_p_ref), rtol=1e-5, atol=1e-4)

    # bf16-operand path (recommended on v6e/v7x): f32 accumulation kept, loose
    # tolerances since operands are rounded before the MXU.
    cin_out_bf, cin_p_bf = cin_layer(xj, x0, W, mxu_dtype=jnp.bfloat16)
    jax.block_until_ready((cin_out_bf, cin_p_bf))
    np.testing.assert_allclose(
        np.asarray(cin_out_bf), np.asarray(cin_out_ref), rtol=5e-2, atol=5e-1)
    np.testing.assert_allclose(
        np.asarray(cin_p_bf), np.asarray(cin_p_ref), rtol=5e-2, atol=2.0)

    print("KERNEL_OK")
</pallas_src>

<mosaic_0001>
module attributes {stable_mosaic.version = 11 : i64} {
  func.func @_cin_kernel(%arg0: i32, %arg1: i32, %arg2: memref<4x256xf32, #tpu.memory_space<vmem>>, %arg3: memref<8x256xf32, #tpu.memory_space<vmem>>, %arg4: memref<6x32xf32, #tpu.memory_space<vmem>>, %arg5: memref<6x256xf32, #tpu.memory_space<vmem>>, %arg6: memref<16x6xf32, #tpu.memory_space<vmem>>, %arg7: memref<6x256xf32, #tpu.memory_space<vmem>>) attributes {dimension_semantics = [#tpu.dimension_semantics<parallel>, #tpu.dimension_semantics<arbitrary>], iteration_bounds = array<i64: 1, 1>, scalar_prefetch = 0 : i64, scratch_operands = 1 : i64, tpu.core_type = #tpu.core_type<tc>, window_params = [{transform_indices = @transform_0, window_bounds = array<i64: 4, 256>}, {transform_indices = @transform_1, window_bounds = array<i64: 8, 256>}, {transform_indices = @transform_2, window_bounds = array<i64: 6, 32>}, {transform_indices = @transform_3, window_bounds = array<i64: 6, 256>}, {transform_indices = @transform_4, window_bounds = array<i64: 16, 6>}]} {
    %c0_i32 = arith.constant 0 : i32
    %0 = arith.cmpi eq, %arg1, %c0_i32 : i32
    %1 = arith.extui %0 : i1 to i32
    %c0_i32_0 = arith.constant 0 : i32
    %2 = arith.cmpi ne, %1, %c0_i32_0 : i32
    scf.if %2 {
      %cst_12 = arith.constant 0.000000e+00 : f32
      %19 = vector.broadcast %cst_12 : f32 to vector<6x256xf32>
      %c0_13 = arith.constant 0 : index
      %c0_14 = arith.constant 0 : index
      %20 = vector.load %arg7[%c0_13, %c0_14] : memref<6x256xf32, #tpu.memory_space<vmem>>, vector<6x256xf32>
      tpu.vector_store %arg7[%c0_13, %c0_14], %19 {strides = array<i32>} : memref<6x256xf32, #tpu.memory_space<vmem>>, vector<6x256xf32>,
    } else {
    }
    %c0 = arith.constant 0 : index
    %c0_1 = arith.constant 0 : index
    %3 = vector.load %arg2[%c0, %c0_1] : memref<4x256xf32, #tpu.memory_space<vmem>>, vector<4x256xf32>
    %c0_2 = arith.constant 0 : index
    %c0_3 = arith.constant 0 : index
    %4 = vector.load %arg3[%c0_2, %c0_3] : memref<8x256xf32, #tpu.memory_space<vmem>>, vector<8x256xf32>
    %c0_4 = arith.constant 0 : index
    %c0_5 = arith.constant 0 : index
    %5 = vector.load %arg4[%c0_4, %c0_5] : memref<6x32xf32, #tpu.memory_space<vmem>>, vector<6x32xf32>
    %6 = vector.shape_cast %3 : vector<4x256xf32> to vector<4x1x256xf32>
    %7 = vector.shape_cast %4 : vector<8x256xf32> to vector<1x8x256xf32>
    %8 = vector.broadcast %6 : vector<4x1x256xf32> to vector<4x8x256xf32>
    %9 = vector.broadcast %7 : vector<1x8x256xf32> to vector<4x8x256xf32>
    %10 = arith.mulf %8, %9 : vector<4x8x256xf32>
    %11 = vector.shape_cast %10 : vector<4x8x256xf32> to vector<32x256xf32>
    %c0_6 = arith.constant 0 : index
    %c0_7 = arith.constant 0 : index
    %12 = vector.load %arg7[%c0_6, %c0_7] : memref<6x256xf32, #tpu.memory_space<vmem>>, vector<6x256xf32>
    %cst = arith.constant dense<0.000000e+00> : vector<6x256xf32>
    %13 = tpu.matmul %5, %11, %cst {dimension_numbers = #tpu.dot_dimension_numbers<[1], [0], [0], [1], [0, 0, 1, 1], [], []>} : vector<6x32xf32>, vector<32x256xf32>, vector<6x256xf32> -> vector<6x256xf32>
    %14 = arith.addf %12, %13 : vector<6x256xf32>
    %c0_8 = arith.constant 0 : index
    %c0_9 = arith.constant 0 : index
    %15 = vector.load %arg7[%c0_8, %c0_9] : memref<6x256xf32, #tpu.memory_space<vmem>>, vector<6x256xf32>
    tpu.vector_store %arg7[%c0_8, %c0_9], %14 {strides = array<i32>} : memref<6x256xf32, #tpu.memory_space<vmem>>, vector<6x256xf32>,
    %c0_i32_10 = arith.constant 0 : i32
    %16 = arith.cmpi eq, %arg1, %c0_i32_10 : i32
    %17 = arith.extui %16 : i1 to i32
    %c0_i32_11 = arith.constant 0 : i32
    %18 = arith.cmpi ne, %17, %c0_i32_11 : i32
    scf.if %18 {
      %c0_12 = arith.constant 0 : index
      %c0_13 = arith.constant 0 : index
      %19 = vector.load %arg7[%c0_12, %c0_13] : memref<6x256xf32, #tpu.memory_space<vmem>>, vector<6x256xf32>
      %c0_14 = arith.constant 0 : index
      %c0_15 = arith.constant 0 : index
      %20 = vector.load %arg5[%c0_14, %c0_15] : memref<6x256xf32, #tpu.memory_space<vmem>>, vector<6x256xf32>
      tpu.vector_store %arg5[%c0_14, %c0_15], %19 {strides = array<i32>} : memref<6x256xf32, #tpu.memory_space<vmem>>, vector<6x256xf32>,
      %21 = vector.shape_cast %19 : vector<6x256xf32> to vector<6x16x16xf32>
      %cst_16 = arith.constant dense<0.000000e+00> : vector<6x16xf32>
      %22 = vector.multi_reduction <add>, %21, %cst_16 [2] : vector<6x16x16xf32> to vector<6x16xf32>
      %23 = tpu.transpose %22, [1, 0] : vector<6x16xf32> -> vector<16x6xf32>
      %c0_17 = arith.constant 0 : index
      %c0_18 = arith.constant 0 : index
      %24 = vector.load %arg6[%c0_17, %c0_18] : memref<16x6xf32, #tpu.memory_space<vmem>>, vector<16x6xf32>
      tpu.vector_store %arg6[%c0_17, %c0_18], %23 {strides = array<i32>} : memref<16x6xf32, #tpu.memory_space<vmem>>, vector<16x6xf32>,
    } else {
    }
    return
  }
  func.func @transform_0(%arg0: i32, %arg1: i32) -> (i32, i32) {
    %c0_i32 = arith.constant 0 : i32
    return %arg1, %arg0 : i32, i32
  }
  func.func @transform_1(%arg0: i32, %arg1: i32) -> (i32, i32) {
    %c0_i32 = arith.constant 0 : i32
    %c0_i32_0 = arith.constant 0 : i32
    return %c0_i32, %arg0 : i32, i32
  }
  func.func @transform_2(%arg0: i32, %arg1: i32) -> (i32, i32) {
    %c0_i32 = arith.constant 0 : i32
    %c0_i32_0 = arith.constant 0 : i32
    return %c0_i32, %arg1 : i32, i32
  }
  func.func @transform_3(%arg0: i32, %arg1: i32) -> (i32, i32) {
    %c0_i32 = arith.constant 0 : i32
    %c0_i32_0 = arith.constant 0 : i32
    return %c0_i32, %arg0 : i32, i32
  }
  func.func @transform_4(%arg0: i32, %arg1: i32) -> (i32, i32) {
    %c0_i32 = arith.constant 0 : i32
    %c0_i32_0 = arith.constant 0 : i32
    return %arg0, %c0_i32 : i32, i32
  }
}

</mosaic_0001>

<bundles_post_ra>
// kernel: tpu_custom_call.1
= control target key start
LH: loop header
LB: loop body
LE: loop exit
PB: predicated region body
PF: predicated region fallthrough
CT: control target
= control target key end

     0   :  { %10 = vsyncpa [#allocation4], 0  ;;  %s966_s0 = inlined_call_operand.hbm [shape: f32[4,256], index: 0, kind: input, shape index: {}]   ;;  %s967_s1 = inlined_call_operand.hbm [shape: f32[8,256], index: 1, kind: input, shape index: {}]   ;;  %s968_s2 = inlined_call_operand.hbm [shape: f32[6,32], index: 2, kind: input, shape index: {}]   ;;  %s969_s3 = inlined_call_operand.hbm [shape: f32[6,256], index: 3, kind: output, shape index: {0}]   ;;  %s970_s4 = inlined_call_operand.vmem [shape: f32[16,6], index: 4, kind: output, shape index: {1}]  }
   0x1   :  { %11 = vsyncpa [#allocation7], 0 }
   0x2   :  { %12 = vsyncpa [#allocation5], 0  ;;  %s795_s15 = smov [#allocation6]   ;;  %s796_s17 = smov [#allocation3]  }
   0x3   :  { %s29_s16 = sshll.u32 %s795_s15, 4  ;;  %s19_s18 = sshll.u32 %s796_s17, 4  ;;  %s30_s16 = int_to_ptr.vmem [resolvable:$true] %s29_s16  ;;  %s20_s18 = int_to_ptr.vmem [resolvable:$true] %s19_s18 }
   0x4   :  { %s701_s21 = scalar_lea.hbm %s967_s1, 256 }
   0x5   :  { %p702_p0 = scmp.ne.s32.totalorder %s967_s1, %s701_s21  ;;  %p705_p1 = scmp.lt.u32.totalorder %s701_s21, %s967_s1 }
   0x7   :  { %p707_p2 = pnand %p705_p1, %p702_p0 }
   0x9   :  { %710 = shalt.err (!%p707_p2)
}
   0xa   :  { %s711_s26 = scalar_lea.vmem %s30_s16, 256  ;;  %p716_p4 = scmp.lt.s32.totalorder %s30_s16, %s30_s16 }
   0xb   :  { %p712_p3 = scmp.ne.s32.totalorder %s30_s16, %s711_s26  ;;  %p717_p5 = scmp.lt.s32.totalorder %s711_s26, %s711_s26 }
   0xd   :  { %p718_p6 = por %p717_p5, %p716_p4 }
   0xf   :  { %p719_p7 = pnand %p718_p6, %p712_p3 }
  0x11   :  { %722 = shalt.err (!%p719_p7)
}
  0x12   :  { %32 = dma.hbm_to_vmem [thread:$0]  %s967_s1, 256, %s30_s16, [#allocation7]  }
  0x13   :  { %s723_s5 = scalar_lea.hbm %s966_s0, 128 }
  0x14   :  { %p724_p8 = scmp.ne.s32.totalorder %s966_s0, %s723_s5  ;;  %p727_p9 = scmp.lt.u32.totalorder %s723_s5, %s966_s0 }
  0x16   :  { %p729_p10 = pnand %p727_p9, %p724_p8 }
  0x18   :  { %732 = shalt.err (!%p729_p10)
}
  0x19   :  { %s733_s10 = scalar_lea.vmem %s20_s18, 128  ;;  %p738_p12 = scmp.lt.s32.totalorder %s20_s18, %s20_s18 }
  0x1a   :  { %p734_p11 = scmp.ne.s32.totalorder %s20_s18, %s733_s10  ;;  %p739_p13 = scmp.lt.s32.totalorder %s733_s10, %s733_s10 }
  0x1c   :  { %p740_p0 = por %p739_p13, %p738_p12 }
  0x1e   :  { %p741_p1 = pnand %p740_p0, %p734_p11 }
  0x20   :  { %744 = shalt.err (!%p741_p1)
}
  0x21   :  { %22 = dma.hbm_to_vmem [thread:$0]  %s966_s0, 128, %s20_s18, [#allocation4]  }
  0x22   :  { %s797_s12 = smov [#allocation8]   ;;  %s745_s16 = scalar_lea.hbm %s968_s2, 128 }
  0x23   :  { %s39_s13 = sshll.u32 %s797_s12, 4  ;;  %p746_p2 = scmp.ne.s32.totalorder %s968_s2, %s745_s16  ;;  %s40_s13 = int_to_ptr.vmem [resolvable:$true] %s39_s13 }
  0x24   :  { %p749_p3 = scmp.lt.u32.totalorder %s745_s16, %s968_s2 }
  0x26   :  { %p751_p4 = pnand %p749_p3, %p746_p2 }
  0x28   :  { %754 = shalt.err (!%p751_p4)
}
  0x29   :  { %s755_s22 = scalar_lea.vmem %s40_s13, 128  ;;  %p760_p6 = scmp.lt.s32.totalorder %s40_s13, %s40_s13 }
  0x2a   :  { %p756_p5 = scmp.ne.s32.totalorder %s40_s13, %s755_s22  ;;  %p761_p7 = scmp.lt.s32.totalorder %s755_s22, %s755_s22 }
  0x2c   :  { %p762_p8 = por %p761_p7, %p760_p6 }
  0x2e   :  { %p763_p9 = pnand %p762_p8, %p756_p5 }
  0x30   :  { %766 = shalt.err (!%p763_p9)
}
  0x31   :  { %42 = dma.hbm_to_vmem [thread:$0]  %s968_s2, 128, %s40_s13, [#allocation7]  }
  0x32   :  { %789 = dma.done.wait [#allocation4], 128  }
  0x33   :  { %790 = vsyncadd [#allocation4], 4294967168 }
  0x34   :  { %791 = dma.done.wait [#allocation7], 384  }
  0x35   :  { %792 = vsyncadd [#allocation7], 4294966912  ;;  %v74_v0 = vlaneseq  ;;  %v798_v1 = vmov 1966171168   ;;  %v799_v4 = vmov 0.0   ;;  %v60_v12 = vld [vmem:[#allocation6 + $0x8] sm:$0xff] }
  0x36   :  { %v72_v2 = vunpack.c.l.s4 %v798_v1  ;;  %56 = vst [vmem:[#allocation2] sm:$0x3f] %v799_v4  ;;  %57 = vst [vmem:[#allocation2 + $0x8] sm:$0x3f] %v799_v4  ;;  %205 = vmatprep.mubr.f32.mxu0 %v799_v4  ;;  %v59_v13 = vld [vmem:[#allocation6] sm:$0xff]  ;;  %vm137_vm0 = vcmask 261120  }
  0x37   :  { %v872_v3 = vshrl.u32 %v74_v0, 7  ;;  %v676_v9 = vld.sshfl [vmem:[#allocation3] sm:$0xff pattern:$0x75316420]  ;;  %v61_v37 = vld [vmem:[#allocation8] sm:$0x3f] }
  0x38   :  { %v73_v5 = vunpack.c.0.s8 %v72_v2  ;;  %v70_v10 = vcombine.high %v676_v9, %v676_v9  ;;  %s800_s2 = smov 80   ;;  %s801_s23 = smov 112   ;;  %v807_v46 = vmov 1983009808   ;;  %v808_v53 = vmov 1934713408  }
  0x39   :  { %v93_v7 = vsub.s32 1, %v872_v3  ;;  %v89_v8 = vsub.s32 0, %v872_v3  ;;  %s802_s24 = smov 64   ;;  %s803_s25 = smov 96   ;;  %v270_v47 = vunpack.c.l.s4 %v807_v46  ;;  %v334_v54 = vunpack.c.l.s4 %v808_v53 }
  0x3a   :  { %v76_v6 = vsub.s32 %v73_v5, %v872_v3  ;;  %s804_s26 = smov 32   ;;  %s805_s27 = smov 48   ;;  %vm503_vm1 = vcmask 130048   ;;  %vm563_vm2 = vcmask 130112   ;;  %vm610_vm3 = vcmask 1041409  }
  0x3b   :  { %s806_s28 = smov 16   ;;  %v271_v50 = vunpack.c.0.s8 %v270_v47  ;;  %v335_v60 = vunpack.c.0.s8 %v334_v54  ;;  %vm612_vm4 = vcmask 1042434   ;;  %vm614_vm5 = vcmask 1043459   ;;  %s809_s29 = smov [#allocation9]  }
  0x3c   :  { %v77_v11 = vrot.slane %v676_v9, %v76_v6  ;;  %v84_v14 = vrot.slane %v70_v10, %v76_v6  ;;  %vm616_vm6 = vcmask 1044484   ;;  %vm618_vm7 = vcmask 1045509   ;;  %s662_s30 = sshll.u32 %s809_s29, 4  ;;  %s663_s30 = int_to_ptr.vmem [resolvable:$true] %s662_s30 }
  0x3d   :  { %v135_v38 = vld [vmem:[#allocation2] sm:$0x3f]  ;;  %v136_v39 = vld [vmem:[#allocation2 + $0x8] sm:$0x3f]  ;;  %v888_v56 = vsub.s32 %v271_v50, %v872_v3  ;;  %s767_s5 = scalar_lea.vmem %s663_s30, 256  ;;  %p772_p11 = scmp.lt.s32.totalorder %s663_s30, %s663_s30 }
  0x3e   :  { %v94_v15 = vrot.slane %v77_v11, %v93_v7  ;;  %v90_v16 = vrot.slane %v77_v11, %v89_v8  ;;  %v85_v17 = vcombine.high %v77_v11, %v77_v11  ;;  %v102_v18 = vrot.slane %v84_v14, %v93_v7  ;;  %p768_p10 = scmp.ne.s32.totalorder %s663_s30, %s767_s5  ;;  %p773_p12 = scmp.lt.s32.totalorder %s767_s5, %s767_s5 }
  0x3f   :  { %v98_v20 = vrot.slane %v84_v14, %v89_v8  ;;  %v86_v22 = vcombine.high %v84_v14, %v84_v14 }
  0x40   :  { %v128_v19 = vmul.f32 %v94_v15, %v60_v12  ;;  %v127_v21 = vmul.f32 %v90_v16, %v59_v13  ;;  %v110_v23 = vrot.slane %v85_v17, %v93_v7  ;;  %v106_v24 = vrot.slane %v85_v17, %v89_v8  ;;  %p774_p13 = por %p773_p12, %p772_p11 }
  0x41   :  { %v130_v25 = vmul.f32 %v102_v18, %v60_v12  ;;  %v129_v26 = vmul.f32 %v98_v20, %v59_v13  ;;  %v118_v27 = vrot.slane %v86_v22, %v93_v7  ;;  %v114_v29 = vrot.slane %v86_v22, %v89_v8 }
  0x42   :  { %v132_v28 = vmul.f32 %v110_v23, %v60_v12  ;;  %v131_v30 = vmul.f32 %v106_v24, %v59_v13  ;;  %v895_v8 = vsub.s32 %v335_v60, %v872_v3  ;;  %p775_p0 = pnand %p774_p13, %p768_p10 }
  0x43   :  { %v678_v31 = vpack.c.bf16 %v130_v25, %v128_v19  ;;  %v680_v32 = vpack.c.bf16 %v129_v26, %v127_v21  ;;  %v134_v33 = vmul.f32 %v118_v27, %v60_v12  ;;  %v133_v34 = vmul.f32 %v114_v29, %v59_v13 }
  0x45   :  { %679 = vmatprep.subr.bf16.mxu0 %v678_v31  ;;  %v682_v35 = vpack.c.bf16 %v134_v33, %v132_v28  ;;  %v684_v36 = vpack.c.bf16 %v133_v34, %v131_v30 }
  0x46   :  { %681 = vmatpush1.bf16.msra.mxu0 %v680_v32 }
  0x47   :  { %683 = vmatprep.subr.bf16.mxu0 %v682_v35 }
  0x4a   :  { %685 = vmatpush1.bf16.msra.mxu0 %v684_v36 }
  0x4d   :  { %677 = vmatmul.mubr.msk.f32.vlgmr.msra.gmra.mrb[0].mxu0 %vm137_vm0, %v61_v37 }
 0x120   :  { %v207_v40 = vpop.f32.mrb[0].mxu0 }
 0x121   :  { %v212_v41 = vadd.f32 %v207_v40, %v135_v38  ;;  %v209_v42 = vpop.f32.mrb[1].mxu0 }
 0x122   :  { %v213_v43 = vadd.f32 %v209_v42, %v136_v39 }
 0x123   :  { %214 = vst [vmem:[#allocation2] sm:$0x3f] %v212_v41 }
 0x124   :  { %215 = vst [vmem:[#allocation2 + $0x8] sm:$0x3f] %v213_v43 }
 0x12a   :  { %v219_v44 = vld [vmem:[#allocation2] sm:$0x3f] }
 0x12b   :  { %230 = vrot.lane.b32.xlu1 %v219_v44, %s800_s2  ;;  %221 = vst [vmem:[#allocation9] sm:$0x3f] %v219_v44  ;;  %224 = vrot.lane.b32.xlu0 %v219_v44, %s801_s23  ;;  %v877_v45 = vld [vmem:[#allocation2 + $0x8] sm:$0x3f] }
 0x12c   :  { %222 = vst [vmem:[#allocation9 + $0x8] sm:$0x3f] %v877_v45 }
 0x12f   :  { %233 = vrot.lane.b32.xlu1 %v219_v44, %s802_s24  ;;  %227 = vrot.lane.b32.xlu0 %v219_v44, %s803_s25 }
 0x133   :  { %239 = vrot.lane.b32.xlu1 %v219_v44, %s804_s26  ;;  %236 = vrot.lane.b32.xlu0 %v219_v44, %s805_s27 }
 0x137   :  { %246 = vrot.lane.b32.xlu1 %v877_v45, %s801_s23  ;;  %242 = vrot.lane.b32.xlu0 %v219_v44, %s806_s28 }
 0x13b   :  { %252 = vrot.lane.b32.xlu1 %v877_v45, %s800_s2  ;;  %249 = vrot.lane.b32.xlu0 %v877_v45, %s803_s25 }
 0x13f   :  { %258 = vrot.lane.b32.xlu1 %v877_v45, %s805_s27  ;;  %255 = vrot.lane.b32.xlu0 %v877_v45, %s802_s24 }
 0x143   :  { %264 = vrot.lane.b32.xlu1 %v877_v45, %s806_s28  ;;  %261 = vrot.lane.b32.xlu0 %v877_v45, %s804_s26 }
 0x19d   :  { %v231_v48 = vpop.permute.xlu1 %230  ;;  %v225_v49 = vpop.permute.xlu0 %224 }
 0x19e   :  { %v283_v57 = vcombine.low %v225_v49, %v231_v48  ;;  %v284_v9 = vcombine.high %v225_v49, %v231_v48 }
 0x1a0   :  { %v291_v63 = vrot.slane %v283_v57, %v888_v56  ;;  %v298_v22 = vrot.slane %v284_v9, %v888_v56 }
 0x1a1   :  { %v234_v51 = vpop.permute.xlu1 %233  ;;  %v228_v52 = vpop.permute.xlu0 %227 }
 0x1a2   :  { %v267_v55 = vcombine.low %v219_v44, %v228_v52  ;;  %v268_v1 = vcombine.high %v219_v44, %v228_v52 }
 0x1a4   :  { %v275_v61 = vrot.slane %v267_v55, %v888_v56  ;;  %v282_v15 = vrot.slane %v268_v1, %v888_v56 }
 0x1a5   :  { %v240_v58 = vpop.permute.xlu1 %239  ;;  %v237_v59 = vpop.permute.xlu0 %236 }
 0x1a6   :  { %v299_v62 = vcombine.low %v234_v51, %v240_v58  ;;  %v300_v2 = vcombine.high %v234_v51, %v240_v58  ;;  %v331_v10 = vcombine.low %v275_v61, %v291_v63  ;;  %v332_v11 = vcombine.high %v275_v61, %v291_v63 }
 0x1a7   :  { %v347_v29 = vcombine.low %v282_v15, %v298_v22 }
 0x1a8   :  { %v307_v12 = vrot.slane %v299_v62, %v888_v56  ;;  %v314_v16 = vrot.slane %v300_v2, %v888_v56  ;;  %v346_v25 = vrot.slane %v332_v11, %v895_v8  ;;  %v339_v27 = vrot.slane %v331_v10, %v895_v8 }
 0x1a9   :  { %v892_v4 = vpop.permute.xlu1 %246  ;;  %v243_v5 = vpop.permute.xlu0 %242  ;;  %v354_v43 = vrot.slane %v347_v29, %v895_v8  ;;  %v553_v29 = vand.u32 127, %v74_v0 }
 0x1aa   :  { %v315_v6 = vcombine.low %v237_v59, %v243_v5  ;;  %v316_v7 = vcombine.high %v237_v59, %v243_v5 }
 0x1ac   :  { %v323_v13 = vrot.slane %v315_v6, %v888_v56  ;;  %v330_v14 = vrot.slane %v316_v7, %v888_v56 }
 0x1ad   :  { %v253_v17 = vpop.permute.xlu1 %252  ;;  %v250_v18 = vpop.permute.xlu0 %249 }
 0x1ae   :  { %v355_v19 = vcombine.low %v307_v12, %v323_v13  ;;  %v356_v20 = vcombine.high %v307_v12, %v323_v13  ;;  %v401_v21 = vcombine.low %v892_v4, %v253_v17  ;;  %v371_v23 = vcombine.low %v314_v16, %v330_v14 }
 0x1af   :  { %v385_v24 = vcombine.low %v877_v45, %v250_v18  ;;  %v402_v55 = vcombine.high %v892_v4, %v253_v17  ;;  %v386_v57 = vcombine.high %v877_v45, %v250_v18 }
 0x1b0   :  { %v370_v26 = vrot.slane %v356_v20, %v895_v8  ;;  %v363_v28 = vrot.slane %v355_v19, %v895_v8  ;;  %v409_v32 = vrot.slane %v401_v21, %v888_v56  ;;  %v378_v38 = vrot.slane %v371_v23, %v895_v8 }
 0x1b1   :  { %v259_v30 = vpop.permute.xlu1 %258  ;;  %v256_v31 = vpop.permute.xlu0 %255  ;;  %v393_v35 = vrot.slane %v385_v24, %v888_v56  ;;  %v416_v4 = vrot.slane %v402_v55, %v888_v56  ;;  %v400_v45 = vrot.slane %v386_v57, %v888_v56 }
 0x1b2   :  { %v381_v33 = vcombine.low %v346_v25, %v370_v26  ;;  %v379_v34 = vcombine.low %v339_v27, %v363_v28  ;;  %v382_v36 = vcombine.high %v346_v25, %v370_v26  ;;  %v380_v37 = vcombine.high %v339_v27, %v363_v28 }
 0x1b3   :  { %v449_v47 = vcombine.low %v393_v35, %v409_v32  ;;  %v383_v50 = vcombine.low %v354_v43, %v378_v38  ;;  %v450_v58 = vcombine.high %v393_v35, %v409_v32  ;;  %v384_v10 = vcombine.high %v354_v43, %v378_v38 }
 0x1b4   :  { %v516_v39 = vsel %vm503_vm1, %v381_v33, 0.0  ;;  %v504_v40 = vsel %vm503_vm1, %v379_v34, 0.0  ;;  %v522_v48 = vsel %vm503_vm1, %v382_v36, 0.0  ;;  %v510_v49 = vsel %vm503_vm1, %v380_v37, 0.0 }
 0x1b5   :  { %v265_v41 = vpop.permute.xlu1 %264  ;;  %517 = vadd.xlane.f32.xlu1 %v516_v39  ;;  %505 = vadd.xlane.f32.xlu0 %v504_v40  ;;  %v262_v42 = vpop.permute.xlu0 %261  ;;  %v528_v61 = vsel %vm503_vm1, %v383_v50, 0.0  ;;  %v457_v62 = vrot.slane %v449_v47, %v895_v8  ;;  %v464_v9 = vrot.slane %v450_v58, %v895_v8  ;;  %v465_v15 = vcombine.low %v400_v45, %v416_v4 }
 0x1b6   :  { %v433_v44 = vcombine.low %v259_v30, %v265_v41  ;;  %v417_v46 = vcombine.low %v256_v31, %v262_v42  ;;  %v434_v51 = vcombine.high %v259_v30, %v265_v41  ;;  %v418_v53 = vcombine.high %v256_v31, %v262_v42 }
 0x1b7   :  { %v534_v17 = vsel %vm503_vm1, %v384_v10, 0.0  ;;  %v472_v19 = vrot.slane %v465_v15, %v895_v8  ;;  %v556_v35 = vsub.s32 %v553_v29, %v872_v3 }
 0x1b8   :  { %v441_v52 = vrot.slane %v433_v44, %v888_v56  ;;  %v425_v54 = vrot.slane %v417_v46, %v888_v56  ;;  %v448_v63 = vrot.slane %v434_v51, %v888_v56  ;;  %v432_v1 = vrot.slane %v418_v53, %v888_v56 }
 0x1b9   :  { %523 = vadd.xlane.f32.xlu1 %v522_v48  ;;  %511 = vadd.xlane.f32.xlu0 %v510_v49 }
 0x1ba   :  { %v473_v59 = vcombine.low %v425_v54, %v441_v52  ;;  %v474_v60 = vcombine.high %v425_v54, %v441_v52  ;;  %v489_v11 = vcombine.low %v432_v1, %v448_v63 }
 0x1bc   :  { %v481_v2 = vrot.slane %v473_v59, %v895_v8  ;;  %v488_v5 = vrot.slane %v474_v60, %v895_v8  ;;  %v496_v56 = vrot.slane %v489_v11, %v895_v8  ;;  %v558_v8 = vadd.s32 4294967288, %v553_v29 }
 0x1bd   :  { %529 = vadd.xlane.f32.xlu1 %v528_v61 }
 0x1be   :  { %v498_v6 = vcombine.high %v457_v62, %v481_v2  ;;  %v497_v7 = vcombine.low %v457_v62, %v481_v2  ;;  %v499_v14 = vcombine.low %v464_v9, %v488_v5  ;;  %v500_v18 = vcombine.high %v464_v9, %v488_v5 }
 0x1bf   :  { %v501_v21 = vcombine.low %v472_v19, %v496_v56  ;;  %v502_v23 = vcombine.high %v472_v19, %v496_v56  ;;  %v561_v33 = vsub.s32 %v558_v8, %v872_v3 }
 0x1c0   :  { %v513_v12 = vsel %vm503_vm1, %v498_v6, 0.0  ;;  %v507_v13 = vsel %vm503_vm1, %v497_v7, 0.0  ;;  %v519_v16 = vsel %vm503_vm1, %v499_v14, 0.0  ;;  %v525_v20 = vsel %vm503_vm1, %v500_v18, 0.0 }
 0x1c1   :  { %514 = vadd.xlane.f32.xlu0 %v513_v12  ;;  %508 = vadd.xlane.f32.xlu1 %v507_v13  ;;  %v531_v22 = vsel %vm503_vm1, %v501_v21, 0.0  ;;  %v537_v24 = vsel %vm503_vm1, %v502_v23, 0.0 }
 0x1c5   :  { %520 = vadd.xlane.f32.xlu0 %v519_v16  ;;  %535 = vadd.xlane.f32.xlu1 %v534_v17 }
 0x1c9   :  { %526 = vadd.xlane.f32.xlu0 %v525_v20 }
 0x1cd   :  { %532 = vadd.xlane.f32.xlu0 %v531_v22 }
 0x1d1   :  { %538 = vadd.xlane.f32.xlu0 %v537_v24 }
 0x242   :  { %v518_v25 = vpop.xlane.xlu1 %517  ;;  %v506_v26 = vpop.xlane.xlu0 %505 }
 0x243   :  { %v557_v40 = vrot.slane %v506_v26, %v556_v35  ;;  %v577_v43 = vrot.slane %v518_v25, %v556_v35 }
 0x246   :  { %v524_v27 = vpop.xlane.xlu1 %523  ;;  %v512_v28 = vpop.xlane.xlu0 %511 }
 0x247   :  { %v568_v41 = vrot.slane %v512_v28, %v556_v35  ;;  %v586_v44 = vrot.slane %v524_v27, %v556_v35 }
 0x24a   :  { %v530_v30 = vpop.xlane.xlu1 %529 }
 0x24b   :  { %v595_v49 = vrot.slane %v530_v30, %v556_v35 }
 0x24e   :  { %v515_v31 = vpop.xlane.xlu0 %514  ;;  %v509_v34 = vpop.xlane.xlu1 %508 }
 0x24f   :  { %v562_v37 = vrot.slane %v509_v34, %v561_v33  ;;  %v572_v38 = vrot.slane %v515_v31, %v561_v33 }
 0x251   :  { %v564_v46 = vsel %vm563_vm2, %v562_v37, %v557_v40  ;;  %v573_v47 = vsel %vm563_vm2, %v572_v38, %v568_v41 }
 0x252   :  { %v521_v32 = vpop.xlane.xlu0 %520  ;;  %v536_v50 = vpop.xlane.xlu1 %535  ;;  %v611_v52 = vsel %vm610_vm3, %v573_v47, %v564_v46 }
 0x253   :  { %v581_v39 = vrot.slane %v521_v32, %v561_v33  ;;  %v604_v55 = vrot.slane %v536_v50, %v556_v35 }
 0x255   :  { %v582_v3 = vsel %vm563_vm2, %v581_v39, %v577_v43 }
 0x256   :  { %v527_v36 = vpop.xlane.xlu0 %526  ;;  %v613_v58 = vsel %vm612_vm4, %v582_v3, %v611_v52 }
 0x257   :  { %v590_v42 = vrot.slane %v527_v36, %v561_v33 }
 0x259   :  { %v591_v51 = vsel %vm563_vm2, %v590_v42, %v586_v44 }
 0x25a   :  { %v533_v0 = vpop.xlane.xlu0 %532  ;;  %v615_v59 = vsel %vm614_vm5, %v591_v51, %v613_v58 }
 0x25b   :  { %v599_v48 = vrot.slane %v533_v0, %v561_v33 }
 0x25d   :  { %v600_v54 = vsel %vm563_vm2, %v599_v48, %v595_v49 }
 0x25e   :  { %v539_v53 = vpop.xlane.xlu0 %538  ;;  %v617_v61 = vsel %vm616_vm6, %v600_v54, %v615_v59 }
 0x25f   :  { %v608_v57 = vrot.slane %v539_v53, %v561_v33 }
 0x261   :  { %v609_v60 = vsel %vm563_vm2, %v608_v57, %v604_v55 }
 0x262   :  { %v619_v62 = vsel %vm618_vm7, %v609_v60, %v617_v61 }
 0x263   :  { %621 = vxpose.xlu1.b32.start.end [1/1] (short) (narrow) %v619_v62, 16 }
 0x264   :  { %778 = shalt.err (!%p775_p0)
}
 0x265   :  { %s779_s8 = scalar_lea.hbm %s969_s3, 256 }
 0x266   :  { %p780_p1 = scmp.ne.s32.totalorder %s969_s3, %s779_s8  ;;  %p783_p2 = scmp.lt.u32.totalorder %s779_s8, %s969_s3 }
 0x268   :  { %p785_p3 = pnand %p783_p2, %p780_p1 }
 0x26a   :  { %788 = shalt.err (!%p785_p3)
}
 0x26b   :  { %665 = dma.vmem_to_hbm [thread:$0]  %s663_s30, 256, %s969_s3, [#allocation5]   ;;  %vm653_vm8 = vcmask 48128  }
 0x2e3   :  { %v637_v63 = vpop.trf.xlu1 }
 0x2e4   :  { %654 = vst.msk [vmem:[%s970_s4] sm:$0xff] %vm653_vm8, %v637_v63 }
 0x2e7   :  { %v638_v1 = vpop.trf.xlu1 }
 0x2e8   :  { %655 = vst.msk [vmem:[%s970_s4 + $0x8] sm:$0xff] %vm653_vm8, %v638_v1 }
 0x2e9   :  { %793 = dma.done.wait [#allocation5], 256  }
 0x2ea   :  { %794 = vsyncadd [#allocation5], 4294967040 }
 0x2eb   :  { %673 = vsyncpa [#allocation4], 1 }
 0x2ec   :  { %674 = vsyncpa [#allocation7], 1 }
 0x2ed   :  { %675 = vsyncpa [#allocation5], 1 }

</bundles_post_ra>
